<compile_context>
chip_gen: v5e
topology: v5e:2x2
jax: 0.10.0
libtpu: 0.0.40
codegen_flags: <defaults>
</compile_context>

<pallas_src>
import functools

import jax
import jax.numpy as jnp
from jax import lax
from jax.experimental import pallas as pl
from jax.experimental.pallas import tpu as pltpu

LANE = 128   # hidden/output feature dims padded to a multiple of this
M_SUB = 256  # max rows processed per in-kernel sub-block


def _round_up(n, m):
    return ((n + m - 1) // m) * m


def _vmem_capacity():
    """Physical per-core VMEM bytes (generation-aware), with a safe fallback."""
    try:
        info = pltpu.get_tpu_info()
        return int(getattr(info, "vmem_capacity_bytes", 64 * 1024 * 1024))
    except Exception:
        return 64 * 1024 * 1024  # conservative: v7x per-TC VMEM


def _default_batch_tile(batch):
    # 512-row tiles amortize the ~0.35us per-grid-step overhead and keep the
    # MXU busy; small batches just use one sublane-rounded tile.
    t = min(512, _round_up(batch, 8))
    # Keep >= 2 grid points when there is enough work so v7x's two TensorCores
    # both get a tile (no-op on single-core v5e/v6e).
    if batch > 256 and pl.cdiv(batch, t) < 2:
        t = _round_up(pl.cdiv(batch, 2), 8)
    return max(8, t)


def _pick_m_sub(batch_tile):
    """Rows per in-kernel sub-block: a divisor of batch_tile, <= M_SUB."""
    if batch_tile <= M_SUB:
        return batch_tile
    for cand in (256, 128, 64, 32, 16, 8):
        if batch_tile % cand == 0:
            return cand
    return batch_tile


def _fused_vmem_need(batch_tile, m_sub, in_dim, in_itemsize, weights, biases,
                     out_itemsize):
    """Rough VMEM working-set estimate (weights single-buffered)."""
    d_out = weights[-1].shape[1]
    weight_bytes = (sum(w.size * w.dtype.itemsize for w in weights)
                    + sum(b.size * b.dtype.itemsize for b in biases))
    io_bytes = (2 * batch_tile * in_dim * in_itemsize      # double-buffered x
                + 2 * batch_tile * d_out * out_itemsize)   # double-buffered out
    max_dim = max([in_dim] + [w.shape[1] for w in weights])
    scratch_bytes = 6 * m_sub * max_dim * 4                 # act/y headroom
    return weight_bytes + io_bytes + scratch_bytes


def _fused_mlp_kernel(x_ref, *refs, n_layers, relu, m_sub):
    """refs = (w0, b0, w1, b1, ..., w_{L-1}, b_{L-1}, o_ref).

    x_ref:  [TB, D0]    input tile (any float dtype; cast to bf16 here)
    w_i:    [Kip, Nip]  bf16 (zero-padded)
    b_i:    [1,  Nip]   f32  (zero-padded)
    o_ref:  [TB, NLp]   bf16 output tile
    """
    o_ref = refs[2 * n_layers]
    tb = x_ref.shape[0]
    n_sub = tb // m_sub

    def sub_block(row):
        act = x_ref[pl.ds(row, m_sub), :].astype(jnp.bfloat16)
        for i in range(n_layers):                       # static unroll over layers
            w = refs[2 * i][...]
            b = refs[2 * i + 1][...]
            y = jnp.dot(act, w, preferred_element_type=jnp.float32) + b
            if relu[i]:
                y = jnp.maximum(y, 0.0)
            if i < n_layers - 1:
                act = y.astype(jnp.bfloat16)            # stays in VMEM, never HBM
            else:
                o_ref[pl.ds(row, m_sub), :] = y.astype(o_ref.dtype)

    if n_sub <= 1:
        sub_block(0)
    else:
        # Sub-tile the batch tile to bound vreg live ranges (act + f32 y).
        def body(s, carry):
            sub_block(pl.multiple_of(s * m_sub, m_sub))
            return carry

        lax.fori_loop(0, n_sub, body, 0, unroll=True)


def fused_mlp(x, weights, biases, *, relu, batch_tile, out_dtype=jnp.bfloat16):
    """Run the whole (padded) MLP in one pallas_call, tiled over the batch."""
    batch, in_dim = x.shape
    n_layers = len(weights)
    assert len(biases) == n_layers and len(relu) == n_layers
    d_out = weights[-1].shape[1]
    m_sub = _pick_m_sub(batch_tile)
    grid = (pl.cdiv(batch, batch_tile),)   # ragged last tile handled by Pallas

    # x: batch-tiled. Weights/biases: whole-array blocks, constant index map,
    # single-buffered (they never change across grid steps).
    in_specs = [pl.BlockSpec((batch_tile, in_dim), lambda i: (i, 0))]
    operands = [x]
    for w, b in zip(weights, biases):
        in_specs.append(pl.BlockSpec(w.shape, lambda i: (0, 0),
                                     pipeline_mode=pl.Buffered(1)))
        in_specs.append(pl.BlockSpec(b.shape, lambda i: (0, 0),
                                     pipeline_mode=pl.Buffered(1)))
        operands += [w, b]

    out_itemsize = jnp.dtype(out_dtype).itemsize
    rows = grid[0] * batch_tile
    flops = 2 * rows * sum(w.shape[0] * w.shape[1] for w in weights)
    bytes_accessed = (x.size * x.dtype.itemsize
                      + sum(w.size * w.dtype.itemsize for w in weights)
                      + sum(b.size * b.dtype.itemsize for b in biases)
                      + batch * d_out * out_itemsize)

    cap = _vmem_capacity()
    need = _fused_vmem_need(batch_tile, m_sub, in_dim, x.dtype.itemsize,
                            weights, biases, out_itemsize)
    vmem_limit = int(min(0.85 * cap, max(32 * 1024 * 1024, 2 * need)))
    vmem_limit = max(vmem_limit, int(need))

    kernel = functools.partial(_fused_mlp_kernel, n_layers=n_layers,
                               relu=tuple(relu), m_sub=m_sub)
    return pl.pallas_call(
        kernel,
        out_shape=jax.ShapeDtypeStruct((batch, d_out), out_dtype),
        grid_spec=pltpu.PrefetchScalarGridSpec(
            num_scalar_prefetch=0,
            grid=grid,
            in_specs=in_specs,
            out_specs=pl.BlockSpec((batch_tile, d_out), lambda i: (i, 0)),
        ),
        compiler_params=pltpu.CompilerParams(
            dimension_semantics=("parallel",),   # batch tiles are independent
            vmem_limit_bytes=vmem_limit,
        ),
        cost_estimate=pl.CostEstimate(
            flops=int(flops), transcendentals=0,
            bytes_accessed=int(bytes_accessed)),
    )(*operands)


class DeepLayerPallas:
    """JAX/Pallas port of DeepLayer: stacked Linear+ReLU, then Linear output.

    Weights: bf16, hidden/output dims zero-padded to 128 (lane-dense); the
    first layer's K dim stays at the true input_dim so x needs no padding.
    An unpadded f32 copy is kept for the reference paths.
    """

    def __init__(self, input_dim, hidden_units, output_dim, key,
                 out_dtype=jnp.bfloat16):
        self.input_dim = input_dim
        self.hidden_units = list(hidden_units)
        self.output_dim = output_dim
        self.out_dtype = out_dtype

        units = [input_dim] + self.hidden_units + [output_dim]
        self.n_layers = len(units) - 1

        self.weights_f32, self.biases_f32 = [], []
        self.weights_pad, self.biases_pad = [], []   # bf16 [Kp,Np] / f32 [1,Np]
        for i in range(self.n_layers):
            fan_in, fan_out = units[i], units[i + 1]
            k_pad = fan_in if i == 0 else _round_up(fan_in, LANE)
            n_pad = _round_up(fan_out, LANE)
            key, wk, bk = jax.random.split(key, 3)
            bound = 1.0 / (fan_in ** 0.5)   # torch Linear default init
            w = jax.random.uniform(wk, (fan_in, fan_out), jnp.float32,
                                   minval=-bound, maxval=bound)
            b = jax.random.uniform(bk, (fan_out,), jnp.float32,
                                   minval=-bound, maxval=bound)
            self.weights_f32.append(w)
            self.biases_f32.append(b)
            wp = (jnp.zeros((k_pad, n_pad), jnp.float32)
                  .at[:fan_in, :fan_out].set(w).astype(jnp.bfloat16))
            bp = jnp.zeros((1, n_pad), jnp.float32).at[0, :fan_out].set(b)
            self.weights_pad.append(wp)
            self.biases_pad.append(bp)

    def __call__(self, x, batch_tile=None):
        batch, in_dim = x.shape
        assert in_dim == self.input_dim

        if batch_tile is None:
            batch_tile = _default_batch_tile(batch)
        batch_tile = max(8, _round_up(batch_tile, 8))

        cap = _vmem_capacity()
        m_sub = _pick_m_sub(batch_tile)
        need = _fused_vmem_need(
            batch_tile, m_sub, in_dim, x.dtype.itemsize,
            self.weights_pad, self.biases_pad,
            jnp.dtype(self.out_dtype).itemsize)

        if need <= 0.7 * cap:
            # Fully fused: all weights VMEM-resident, activations never touch HBM.
            relu = tuple(i < self.n_layers - 1 for i in range(self.n_layers))
            out_pad = fused_mlp(x, self.weights_pad, self.biases_pad,
                                relu=relu, batch_tile=batch_tile,
                                out_dtype=self.out_dtype)
        else:
            # Guard for towers too big for per-core VMEM: stream layer by layer.
            # TODO(synk): tile the hidden (N) dimension instead of HBM round-trips
            # for single layers that are individually too wide for VMEM.
            act = x
            for i in range(self.n_layers):
                last = i == self.n_layers - 1
                act = fused_mlp(act, [self.weights_pad[i]], [self.biases_pad[i]],
                                relu=(not last,), batch_tile=batch_tile,
                                out_dtype=(self.out_dtype if last
                                           else jnp.bfloat16))
            out_pad = act

        # Rows are already exact (no batch padding); drop the padded columns.
        return out_pad[:, : self.output_dim]


def _reference_forward_bf16(model, x):
    """Pure-JAX reference matching the kernel's bf16-matmul / f32-accum path."""
    act = x.astype(jnp.bfloat16)
    for i in range(model.n_layers):
        w = model.weights_f32[i].astype(jnp.bfloat16)
        y = jnp.dot(act, w, preferred_element_type=jnp.float32) + model.biases_f32[i]
        if i < model.n_layers - 1:
            act = jnp.maximum(y, 0.0).astype(jnp.bfloat16)
        else:
            return y
    return act


def _reference_forward_f32(model, x):
    """Pure-JAX f32 reference matching the original torch semantics."""
    for i in range(model.n_layers):
        x = x @ model.weights_f32[i] + model.biases_f32[i]
        if i < model.n_layers - 1:
            x = jnp.maximum(x, 0.0)
    return x


if __name__ == "__main__":
    key = jax.random.PRNGKey(0)
    key, xk, mk, xk2 = jax.random.split(key, 4)

    batch = 8
    input_dim = 32
    hidden_units = [64, 32]
    output_dim = 8

    x = jax.random.normal(xk, (batch, input_dim), jnp.float32)
    model = DeepLayerPallas(input_dim, hidden_units, output_dim, mk)

    out = jax.block_until_ready(model(x))
    assert out.shape == (batch, output_dim)
    out_f32 = out.astype(jnp.float32)

    # Exact-path check against a bf16-matmul / f32-accum reference
    # (kernel additionally rounds the output to bf16).
    ref_bf16 = _reference_forward_bf16(model, x)
    assert jnp.allclose(out_f32, ref_bf16, atol=3e-2, rtol=3e-2)

    # Semantic check against the full-f32 torch-equivalent forward.
    ref_f32 = _reference_forward_f32(model, x)
    assert jnp.allclose(out_f32, ref_f32, atol=7e-2, rtol=7e-2)

    # Ragged-batch path (grid block larger than remaining rows).
    x2 = jax.random.normal(xk2, (20, input_dim), jnp.float32)
    out2 = jax.block_until_ready(model(x2)).astype(jnp.float32)
    assert out2.shape == (20, output_dim)
    assert jnp.allclose(out2, _reference_forward_f32(model, x2),
                        atol=7e-2, rtol=7e-2)

    print("KERNEL_OK")
</pallas_src>

<mosaic_0001>
module attributes {stable_mosaic.version = 11 : i64} {
  func.func @_fused_mlp_kernel(%arg0: i32, %arg1: memref<8x32xf32, #tpu.memory_space<vmem>>, %arg2: memref<32x128xbf16, #tpu.memory_space<vmem>>, %arg3: memref<1x128xf32, #tpu.memory_space<vmem>>, %arg4: memref<128x128xbf16, #tpu.memory_space<vmem>>, %arg5: memref<1x128xf32, #tpu.memory_space<vmem>>, %arg6: memref<128x128xbf16, #tpu.memory_space<vmem>>, %arg7: memref<1x128xf32, #tpu.memory_space<vmem>>, %arg8: memref<8x128xbf16, #tpu.memory_space<vmem>>) attributes {dimension_semantics = [#tpu.dimension_semantics<parallel>], iteration_bounds = array<i64: 1>, scalar_prefetch = 0 : i64, scratch_operands = 0 : i64, tpu.core_type = #tpu.core_type<tc>, window_params = [{transform_indices = @transform_0, window_bounds = array<i64: 8, 32>}, {pipeline_mode = #tpu.pipeline_mode<synchronous>, transform_indices = @transform_1, window_bounds = array<i64: 32, 128>}, {pipeline_mode = #tpu.pipeline_mode<synchronous>, transform_indices = @transform_2, window_bounds = array<i64: 1, 128>}, {pipeline_mode = #tpu.pipeline_mode<synchronous>, transform_indices = @transform_3, window_bounds = array<i64: 128, 128>}, {pipeline_mode = #tpu.pipeline_mode<synchronous>, transform_indices = @transform_4, window_bounds = array<i64: 1, 128>}, {pipeline_mode = #tpu.pipeline_mode<synchronous>, transform_indices = @transform_5, window_bounds = array<i64: 128, 128>}, {pipeline_mode = #tpu.pipeline_mode<synchronous>, transform_indices = @transform_6, window_bounds = array<i64: 1, 128>}, {transform_indices = @transform_7, window_bounds = array<i64: 8, 128>}]} {
    %c0 = arith.constant 0 : index
    %c0_0 = arith.constant 0 : index
    %0 = vector.load %arg1[%c0, %c0_0] : memref<8x32xf32, #tpu.memory_space<vmem>>, vector<8x32xf32>
    %1 = arith.truncf %0 : vector<8x32xf32> to vector<8x32xbf16>
    %c0_1 = arith.constant 0 : index
    %c0_2 = arith.constant 0 : index
    %2 = vector.load %arg2[%c0_1, %c0_2] : memref<32x128xbf16, #tpu.memory_space<vmem>>, vector<32x128xbf16>
    %c0_3 = arith.constant 0 : index
    %c0_4 = arith.constant 0 : index
    %3 = vector.load %arg3[%c0_3, %c0_4] : memref<1x128xf32, #tpu.memory_space<vmem>>, vector<1x128xf32>
    %cst = arith.constant dense<0.000000e+00> : vector<8x128xf32>
    %4 = tpu.matmul %1, %2, %cst {dimension_numbers = #tpu.dot_dimension_numbers<[1], [0], [0], [1], [0, 0, 1, 1], [], []>} : vector<8x32xbf16>, vector<32x128xbf16>, vector<8x128xf32> -> vector<8x128xf32>
    %5 = vector.broadcast %3 : vector<1x128xf32> to vector<8x128xf32>
    %6 = arith.addf %4, %5 : vector<8x128xf32>
    %cst_5 = arith.constant 0.000000e+00 : f32
    %7 = vector.broadcast %cst_5 : f32 to vector<8x128xf32>
    %8 = arith.maximumf %6, %7 : vector<8x128xf32>
    %9 = arith.truncf %8 : vector<8x128xf32> to vector<8x128xbf16>
    %c0_6 = arith.constant 0 : index
    %c0_7 = arith.constant 0 : index
    %10 = vector.load %arg4[%c0_6, %c0_7] : memref<128x128xbf16, #tpu.memory_space<vmem>>, vector<128x128xbf16>
    %c0_8 = arith.constant 0 : index
    %c0_9 = arith.constant 0 : index
    %11 = vector.load %arg5[%c0_8, %c0_9] : memref<1x128xf32, #tpu.memory_space<vmem>>, vector<1x128xf32>
    %cst_10 = arith.constant dense<0.000000e+00> : vector<8x128xf32>
    %12 = tpu.matmul %9, %10, %cst_10 {dimension_numbers = #tpu.dot_dimension_numbers<[1], [0], [0], [1], [0, 0, 1, 1], [], []>} : vector<8x128xbf16>, vector<128x128xbf16>, vector<8x128xf32> -> vector<8x128xf32>
    %13 = vector.broadcast %11 : vector<1x128xf32> to vector<8x128xf32>
    %14 = arith.addf %12, %13 : vector<8x128xf32>
    %cst_11 = arith.constant 0.000000e+00 : f32
    %15 = vector.broadcast %cst_11 : f32 to vector<8x128xf32>
    %16 = arith.maximumf %14, %15 : vector<8x128xf32>
    %17 = arith.truncf %16 : vector<8x128xf32> to vector<8x128xbf16>
    %c0_12 = arith.constant 0 : index
    %c0_13 = arith.constant 0 : index
    %18 = vector.load %arg6[%c0_12, %c0_13] : memref<128x128xbf16, #tpu.memory_space<vmem>>, vector<128x128xbf16>
    %c0_14 = arith.constant 0 : index
    %c0_15 = arith.constant 0 : index
    %19 = vector.load %arg7[%c0_14, %c0_15] : memref<1x128xf32, #tpu.memory_space<vmem>>, vector<1x128xf32>
    %cst_16 = arith.constant dense<0.000000e+00> : vector<8x128xf32>
    %20 = tpu.matmul %17, %18, %cst_16 {dimension_numbers = #tpu.dot_dimension_numbers<[1], [0], [0], [1], [0, 0, 1, 1], [], []>} : vector<8x128xbf16>, vector<128x128xbf16>, vector<8x128xf32> -> vector<8x128xf32>
    %21 = vector.broadcast %19 : vector<1x128xf32> to vector<8x128xf32>
    %22 = arith.addf %20, %21 : vector<8x128xf32>
    %23 = arith.truncf %22 : vector<8x128xf32> to vector<8x128xbf16>
    %c0_17 = arith.constant 0 : index
    %c0_18 = arith.constant 0 : index
    %24 = vector.load %arg8[%c0_17, %c0_18] : memref<8x128xbf16, #tpu.memory_space<vmem>>, vector<8x128xbf16>
    tpu.vector_store %arg8[%c0_17, %c0_18], %23 {strides = array<i32>} : memref<8x128xbf16, #tpu.memory_space<vmem>>, vector<8x128xbf16>,
    return
  }
  func.func @transform_0(%arg0: i32) -> (i32, i32) {
    %c0_i32 = arith.constant 0 : i32
    %c0_i32_0 = arith.constant 0 : i32
    return %arg0, %c0_i32 : i32, i32
  }
  func.func @transform_1(%arg0: i32) -> (i32, i32) {
    %c0_i32 = arith.constant 0 : i32
    %c0_i32_0 = arith.constant 0 : i32
    %c0_i32_1 = arith.constant 0 : i32
    return %c0_i32, %c0_i32_0 : i32, i32
  }
  func.func @transform_2(%arg0: i32) -> (i32, i32) {
    %c0_i32 = arith.constant 0 : i32
    %c0_i32_0 = arith.constant 0 : i32
    %c0_i32_1 = arith.constant 0 : i32
    return %c0_i32, %c0_i32_0 : i32, i32
  }
  func.func @transform_3(%arg0: i32) -> (i32, i32) {
    %c0_i32 = arith.constant 0 : i32
    %c0_i32_0 = arith.constant 0 : i32
    %c0_i32_1 = arith.constant 0 : i32
    return %c0_i32, %c0_i32_0 : i32, i32
  }
  func.func @transform_4(%arg0: i32) -> (i32, i32) {
    %c0_i32 = arith.constant 0 : i32
    %c0_i32_0 = arith.constant 0 : i32
    %c0_i32_1 = arith.constant 0 : i32
    return %c0_i32, %c0_i32_0 : i32, i32
  }
  func.func @transform_5(%arg0: i32) -> (i32, i32) {
    %c0_i32 = arith.constant 0 : i32
    %c0_i32_0 = arith.constant 0 : i32
    %c0_i32_1 = arith.constant 0 : i32
    return %c0_i32, %c0_i32_0 : i32, i32
  }
  func.func @transform_6(%arg0: i32) -> (i32, i32) {
    %c0_i32 = arith.constant 0 : i32
    %c0_i32_0 = arith.constant 0 : i32
    %c0_i32_1 = arith.constant 0 : i32
    return %c0_i32, %c0_i32_0 : i32, i32
  }
  func.func @transform_7(%arg0: i32) -> (i32, i32) {
    %c0_i32 = arith.constant 0 : i32
    %c0_i32_0 = arith.constant 0 : i32
    return %arg0, %c0_i32 : i32, i32
  }
}

</mosaic_0001>

<bundles_post_ra>
// kernel: tpu_custom_call.1
= control target key start
LH: loop header
LB: loop body
LE: loop exit
PB: predicated region body
PF: predicated region fallthrough
CT: control target
= control target key end

     0   :  { %12 = vsyncpa [#allocation3], 0  ;;  %s615_s0 = inlined_call_operand.hbm [shape: f32[8,32], index: 0, kind: input, shape index: {}]   ;;  %s616_s1 = inlined_call_operand.hbm [shape: bf16[32,128], index: 1, kind: input, shape index: {}]   ;;  %s617_s2 = inlined_call_operand.vmem [shape: f32[1,128], index: 2, kind: input, shape index: {}]   ;;  %s618_s3 = inlined_call_operand.hbm [shape: bf16[128,128], index: 3, kind: input, shape index: {}]   ;;  %s619_s4 = inlined_call_operand.vmem [shape: f32[1,128], index: 4, kind: input, shape index: {}]   ;;  %s620_s5 = inlined_call_operand.hbm [shape: bf16[128,128], index: 5, kind: input, shape index: {}]   ;;  %s621_s6 = inlined_call_operand.vmem [shape: f32[1,128], index: 6, kind: input, shape index: {}]   ;;  %s622_s7 = inlined_call_operand.hbm [shape: bf16[8,128], index: 7, kind: output, shape index: {}]  }
   0x1   :  { %13 = vsyncpa [#allocation6], 0 }
   0x2   :  { %14 = vsyncpa [#allocation9], 0  ;;  %s31_s26 = sshll.u32 %s616_s1, 4  ;;  %s32_s26 = int_to_ptr.hbm [resolvable:$true] %s31_s26 }
   0x3   :  { %15 = vsyncpa [#allocation4], 0  ;;  %s544_s27 = smov [#allocation5]   ;;  %s21_s8 = sshll.u32 %s615_s0, 4  ;;  %s22_s8 = int_to_ptr.hbm [resolvable:$true] %s21_s8 }
   0x4   :  { %s33_s28 = sshll.u32 %s544_s27, 4  ;;  %s545_s9 = smov 64   ;;  %s34_s28 = int_to_ptr.vmem [resolvable:$true] %s33_s28 }
   0x5   :  { %s546_s10 = smov 4   ;;  %s547_s11 = smov [#allocation2]  }
   0x6   :  { %39 = dma.hbm_to_vmem [thread:$0]  %s32_s26, 256, %s34_s28, [#allocation6], %s545_s9, %s545_s9, %s546_s10  }
   0x7   :  { %s23_s12 = sshll.u32 %s547_s11, 4  ;;  %s46_s15 = sshll.u32 %s618_s3, 4  ;;  %s24_s12 = int_to_ptr.vmem [resolvable:$true] %s23_s12  ;;  %s47_s15 = int_to_ptr.hbm [resolvable:$true] %s46_s15 }
   0x8   :  { %26 = dma.hbm_to_vmem [thread:$0]  %s22_s8, 128, %s24_s12, [#allocation3]  }
   0x9   :  { %s61_s17 = sshll.u32 %s620_s5, 4  ;;  %s548_s18 = smov [#allocation7]   ;;  %s62_s17 = int_to_ptr.hbm [resolvable:$true] %s61_s17 }
   0xa   :  { %s48_s19 = sshll.u32 %s548_s18, 4  ;;  %s549_s0 = smov [#allocation8]   ;;  %s49_s19 = int_to_ptr.vmem [resolvable:$true] %s48_s19 }
   0xb   :  { %54 = dma.hbm_to_vmem [thread:$0]  %s47_s15, 1024, %s49_s19, [#allocation6], %s545_s9, %s545_s9, %s546_s10  }
   0xc   :  { %s63_s20 = sshll.u32 %s549_s0, 4  ;;  %s64_s20 = int_to_ptr.vmem [resolvable:$true] %s63_s20 }
   0xd   :  { %69 = dma.hbm_to_vmem [thread:$0]  %s62_s17, 1024, %s64_s20, [#allocation9], %s545_s9, %s545_s9, %s546_s10  }
   0xe   :  { %536 = dma.done.wait [#allocation3], 128  }
   0xf   :  { %537 = vsyncadd [#allocation3], 4294967168 }
  0x10   :  { %538 = dma.done.wait [#allocation6], 1280  }
  0x11   :  { %539 = vsyncadd [#allocation6], 4294966016 }
  0x12   :  { %540 = dma.done.wait [#allocation9], 1024  }
  0x13   :  { %541 = vsyncadd [#allocation9], 4294966272  ;;  %v389_v0 = vld [vmem:[#allocation5 + $0x8] sm:$0xff]  ;;  %v388_v2 = vld [vmem:[#allocation5] sm:$0xff]  ;;  %vm111_vm0 = vcmask 261120   ;;  %s550_s24 = smov [#allocation10]  }
  0x14   :  { %v397_v1 = vld [vmem:[#allocation7 + $0x38] sm:$0xff]  ;;  %121 = vmatpush.bf16.msra.mxu0 %v389_v0  ;;  %v89_v3 = vld [vmem:[#allocation2] sm:$0xff]  ;;  %v396_v4 = vld [vmem:[#allocation7 + $0x30] sm:$0xff]  ;;  %s301_s25 = sshll.u32 %s550_s24, 4  ;;  %s303_s28 = sshll.u32 %s622_s7, 4  ;;  %s302_s25 = int_to_ptr.vmem [resolvable:$true] %s301_s25  ;;  %s304_s28 = int_to_ptr.hbm [resolvable:$true] %s303_s28 }
  0x15   :  { %198 = vmatpush.bf16.msra.mxu1 %v397_v1  ;;  %v90_v5 = vpack.c.bf16 %v89_v3, %v89_v3  ;;  %v395_v6 = vld [vmem:[#allocation7 + $0x28] sm:$0xff]  ;;  %v394_v7 = vld [vmem:[#allocation7 + $0x20] sm:$0xff]  ;;  %v393_v8 = vld [vmem:[#allocation7 + $0x18] sm:$0xff] }
  0x16   :  { %v392_v9 = vld [vmem:[#allocation7 + $0x10] sm:$0xff]  ;;  %v391_v10 = vld [vmem:[#allocation7 + $0x8] sm:$0xff]  ;;  %v390_v11 = vld [vmem:[#allocation7] sm:$0xff] }
  0x17   :  { %v405_v12 = vld [vmem:[#allocation8 + $0x38] sm:$0xff]  ;;  %v404_v13 = vld [vmem:[#allocation8 + $0x30] sm:$0xff]  ;;  %v403_v14 = vld [vmem:[#allocation8 + $0x28] sm:$0xff] }
  0x18   :  { %122 = vmatpush.bf16.msra.mxu0 %v388_v2  ;;  %281 = vmatpush.bf16.msra.mxu2 %v405_v12  ;;  %v402_v15 = vld [vmem:[#allocation8 + $0x20] sm:$0xff]  ;;  %v401_v16 = vld [vmem:[#allocation8 + $0x18] sm:$0xff]  ;;  %v400_v17 = vld [vmem:[#allocation8 + $0x10] sm:$0xff] }
  0x19   :  { %199 = vmatpush.bf16.msra.mxu1 %v396_v4  ;;  %v413_v18 = vld [vmem:[%s617_s2] ss:$0 sm:$0xff]  ;;  %v398_v25 = vld [vmem:[#allocation8] sm:$0xff] }
  0x1a   :  { %v399_v24 = vld [vmem:[#allocation8 + $0x8] sm:$0xff] }
  0x1b   :  { %323 = vmatmul.msk.bf16.vlgmr.msra.gmra.mxu0 %vm111_vm0, %v90_v5  ;;  %v414_v26 = vld [vmem:[%s619_s4] ss:$0 sm:$0xff] }
  0x1c   :  { %282 = vmatpush.bf16.msra.mxu2 %v404_v13  ;;  %v415_v32 = vld [vmem:[%s621_s6] ss:$0 sm:$0xff] }
  0x1d   :  { %200 = vmatpush.bf16.msra.mxu1 %v395_v6 }
  0x20   :  { %283 = vmatpush.bf16.msra.mxu2 %v403_v14 }
  0x21   :  { %201 = vmatpush.bf16.msra.mxu1 %v394_v7 }
  0x24   :  { %284 = vmatpush.bf16.msra.mxu2 %v402_v15 }
  0x25   :  { %202 = vmatpush.bf16.msra.mxu1 %v393_v8 }
  0x28   :  { %285 = vmatpush.bf16.msra.mxu2 %v401_v16 }
  0x29   :  { %203 = vmatpush.bf16.msra.mxu1 %v392_v9 }
  0x2c   :  { %286 = vmatpush.bf16.msra.mxu2 %v400_v17 }
  0x2d   :  { %204 = vmatpush.bf16.msra.mxu1 %v391_v10 }
  0x30   :  { %287 = vmatpush.bf16.msra.mxu2 %v399_v24 }
  0x31   :  { %205 = vmatpush.bf16.msra.mxu1 %v390_v11 }
  0x34   :  { %288 = vmatpush.bf16.msra.mxu2 %v398_v25 }
  0x98   :  { %v124_v19 = vpop.f32.mrf.mxu0 }
  0x99   :  { %v125_v20 = vadd.f32 %v413_v18, %v124_v19 }
  0x9b   :  { %v128_v21 = vmax.f32 %v125_v20, 0.0 }
  0x9d   :  { %v129_v22 = vpack.c.bf16 %v128_v21, %v128_v21 }
  0x9f   :  { %206 = vmatmul.bf16.vlgmr.msra.gmra.mxu1 %v129_v22 }
  0xa0   :  { %v126_v23 = vpop.f32.mrf.mxu0 }
 0x11c   :  { %v207_v27 = vpop.f32.mrf.mxu1 }
 0x11d   :  { %v208_v28 = vadd.f32 %v414_v26, %v207_v27 }
 0x11f   :  { %v211_v29 = vmax.f32 %v208_v28, 0.0 }
 0x121   :  { %v212_v30 = vpack.c.bf16 %v211_v29, %v211_v29 }
 0x123   :  { %289 = vmatmul.bf16.vlgmr.msra.gmra.mxu2 %v212_v30 }
 0x124   :  { %v209_v31 = vpop.f32.mrf.mxu1 }
 0x1a6   :  { %v290_v33 = vpop.f32.mrf.mxu2 }
 0x1a7   :  { %v291_v34 = vadd.f32 %v415_v32, %v290_v33 }
 0x1a9   :  { %v294_v35 = vpack.c.bf16 %v291_v34, %v291_v34 }
 0x1ab   :  { %295 = vst [vmem:[#allocation10] sm:$0xf] %v294_v35 }
 0x1ac   :  { %306 = dma.vmem_to_hbm [thread:$0]  %s302_s25, 64, %s304_s28, [#allocation4]  }
 0x1ae   :  { %v292_v36 = vpop.f32.mrf.mxu2 }
 0x1af   :  { %542 = dma.done.wait [#allocation4], 64  }
 0x1b0   :  { %543 = vsyncadd [#allocation4], 4294967232 }
 0x1b1   :  { %311 = vsyncpa [#allocation3], 1 }
 0x1b2   :  { %312 = vsyncpa [#allocation6], 1 }
 0x1b3   :  { %313 = vsyncpa [#allocation9], 1 }
 0x1b4   :  { %314 = vsyncpa [#allocation4], 1 }

</bundles_post_ra>
